<compile_context>
chip_gen: v7x
topology: tpu7x:2x2x1
jax: 0.10.0
libtpu: 0.0.40
codegen_flags: <defaults>
</compile_context>

<pallas_src>
from functools import partial

import jax
import jax.numpy as jnp
from jax.experimental import pallas as pl
from jax.experimental.pallas import tpu as pltpu


def _round_up(v: int, m: int) -> int:
    return (v + m - 1) // m * m


# ----------------------------------------------------------------------------
# Pallas kernel: linear layer  y = x @ W_t + b   (the inner module's forward)
# Grid = (rows "parallel", cols "parallel", K "arbitrary")
# ----------------------------------------------------------------------------
def _linear_kernel(x_ref, wt_ref, b_ref, o_ref, acc_ref):
    # x_ref:   [block_n, block_k]      bf16 activation tile
    # wt_ref:  [block_k, block_dout]   bf16 pre-transposed weight tile
    # b_ref:   [1, block_dout]         f32 bias tile (follows the column axis)
    # o_ref:   [block_n, block_dout]   f32 lane-dense output tile
    # acc_ref: [block_n, block_dout]   f32 VMEM accumulator scratch
    k = pl.program_id(2)

    @pl.when(k == 0)
    def _init():
        acc_ref[...] = jnp.zeros_like(acc_ref)

    acc_ref[...] += jnp.dot(
        x_ref[...], wt_ref[...], preferred_element_type=jnp.float32
    )

    @pl.when(k == pl.num_programs(2) - 1)
    def _finalize():
        # Bias add + cast stay in f32 (v5e VPU/EUP have no bf16 path).
        o_ref[...] = (acc_ref[...] + b_ref[...]).astype(o_ref.dtype)


def _choose_block_n(n_pad8: int, cap: int) -> int:
    """Largest row tile <= cap keeping row padding bounded (<= 64 rows)."""
    for cand in (512, 256, 128, 64, 32, 16, 8):
        if cand > cap or cand > n_pad8:
            continue
        if _round_up(n_pad8, cand) - n_pad8 <= 64:
            return cand
    return 8


@partial(jax.jit, static_argnums=(3,))
def linear_pallas_forward(x, wt_pad, b_pad, d_out):
    """y = x @ W.T + b with a tiled Pallas TPU kernel.

    x:      [N, D_in]              float32 activations
    wt_pad: [D_in_pad, D_out_pad]  bf16, pre-transposed + zero-padded weight
    b_pad:  [1, D_out_pad]         f32, zero-padded bias
    d_out:  static int, the true (unpadded) output width
    """
    n, d_in = x.shape
    d_in_pad, d_out_pad = wt_pad.shape

    # --- tiling plan (all static under jit) ---------------------------------
    n_pad8 = _round_up(max(n, 8), 8)
    block_n = _choose_block_n(n_pad8, cap=512)  # bf16 inputs: 512-row tiles fit
    n_pad = _round_up(n_pad8, block_n)

    block_k = min(d_in_pad, 512)        # K tile: bounds x and wt VMEM tiles
    block_dout = min(d_out_pad, 512)    # 256-multiple keeps v6e/v7x MXU full
    # v7x has 2 TensorCores: if the grid would otherwise be a single step,
    # split D_out so both cores get work (no effect on 1-TC v5e/v6e).
    if (n_pad // block_n == 1 and d_out_pad // block_dout == 1
            and d_out_pad % 256 == 0):
        block_dout = d_out_pad // 2

    # --- activation cast / padding (skipped when already aligned) -----------
    x_bf16 = x.astype(jnp.bfloat16)
    if n_pad != n or d_in_pad != d_in:
        x_in = jnp.zeros((n_pad, d_in_pad), jnp.bfloat16).at[:n, :d_in].set(x_bf16)
    else:
        x_in = x_bf16

    grid = (n_pad // block_n, d_out_pad // block_dout, d_in_pad // block_k)

    cost = pl.CostEstimate(
        flops=2 * n_pad * d_in_pad * d_out_pad,
        transcendentals=0,
        bytes_accessed=(
            n_pad * d_in_pad * 2            # x (bf16)
            + d_in_pad * d_out_pad * 2      # weight (bf16)
            + d_out_pad * 4                 # bias (f32)
            + n_pad * d_out_pad * 4         # output (f32)
        ),
    )

    y_pad = pl.pallas_call(
        _linear_kernel,
        out_shape=jax.ShapeDtypeStruct((n_pad, d_out_pad), jnp.float32),
        grid_spec=pltpu.PrefetchScalarGridSpec(
            num_scalar_prefetch=0,
            grid=grid,
            in_specs=[
                pl.BlockSpec((block_n, block_k), lambda i, j, k: (i, k)),
                pl.BlockSpec((block_k, block_dout), lambda i, j, k: (k, j)),
                pl.BlockSpec((1, block_dout), lambda i, j, k: (0, j)),
            ],
            out_specs=pl.BlockSpec((block_n, block_dout), lambda i, j, k: (i, j)),
            scratch_shapes=[pltpu.VMEM((block_n, block_dout), jnp.float32)],
        ),
        compiler_params=pltpu.CompilerParams(
            dimension_semantics=("parallel", "parallel", "arbitrary"),
            vmem_limit_bytes=32 * 1024 * 1024,  # explicit; safe on v5e/v6e/v7x
        ),
        cost_estimate=cost,
    )(x_in, wt_pad, b_pad)

    if n_pad != n or d_out_pad != d_out:
        return y_pad[:n, :d_out]
    return y_pad


# ----------------------------------------------------------------------------
# Minimal "module" stand-ins (inner module + a DDP-like single wrapper)
# ----------------------------------------------------------------------------
class InnerLinearModule:
    """The twice-wrapped module: a Linear layer running on the Pallas kernel."""

    def __init__(self, d_in, d_out, key):
        k_w, k_b = jax.random.split(key)
        # PyTorch nn.Linear layout: weight [out_features, in_features]
        self.weight = jax.random.normal(k_w, (d_out, d_in), jnp.float32) * 0.02
        self.bias = jax.random.normal(k_b, (d_out,), jnp.float32) * 0.02
        self.xyz = "hello world"  # example extra attribute, as in the docstring
        self._refresh_kernel_params()

    def _refresh_kernel_params(self):
        """Pre-transpose + zero-pad + bf16-cast parameters once (not per call)."""
        d_out, d_in = self.weight.shape
        d_in_pad = _round_up(d_in, 128)
        d_out_pad = _round_up(d_out, 128)
        self._wt_pad = (
            jnp.zeros((d_in_pad, d_out_pad), jnp.float32)
            .at[:d_in, :d_out]
            .set(self.weight.T)
            .astype(jnp.bfloat16)
        )
        self._b_pad = (
            jnp.zeros((1, d_out_pad), jnp.float32).at[0, :d_out].set(self.bias)
        )

    def forward(self, x):
        return linear_pallas_forward(
            x, self._wt_pad, self._b_pad, self.weight.shape[0]
        )

    def __call__(self, *args, **kwargs):
        return self.forward(*args, **kwargs)

    def state_dict(self):
        return {"weight": self.weight, "bias": self.bias}

    def load_state_dict(self, sd):
        self.weight = sd["weight"]
        self.bias = sd["bias"]
        self._refresh_kernel_params()


class FakeDDP:
    """Stand-in for DistributedDataParallel: wraps a module as `.module` and
    forwards calls to it."""
    # TODO(synk): DDP gradient bucketing / all-reduce has no forward-pass
    # equivalent; only the forward delegation is reproduced here.

    def __init__(self, module):
        self.module = module

    def forward(self, *args, **kwargs):
        return self.module(*args, **kwargs)

    def __call__(self, *args, **kwargs):
        return self.forward(*args, **kwargs)


# ----------------------------------------------------------------------------
# ModuleProxyWrapper — exact forward/attr/state_dict delegation semantics
# ----------------------------------------------------------------------------
class ModuleProxyWrapper:
    """Wrap a DDP-style module and forward requests for missing attributes to
    the module wrapped by DDP (the twice-wrapped module)."""

    def __init__(self, module):
        assert hasattr(module, "module"), (
            "ModuleProxyWrapper expects input to wrap another module"
        )
        object.__setattr__(self, "module", module)

    def __getattr__(self, name):
        """Forward missing attributes to twice-wrapped module."""
        module = object.__getattribute__(self, "module")
        try:
            return getattr(module, name)
        except AttributeError:
            return getattr(module.module, name)

    def state_dict(self, *args, **kwargs):
        """Forward to the twice-wrapped module."""
        return self.module.module.state_dict(*args, **kwargs)

    def load_state_dict(self, *args, **kwargs):
        """Forward to the twice-wrapped module."""
        return self.module.module.load_state_dict(*args, **kwargs)

    def forward(self, *args, **kwargs):
        # Pass-through: the proxy itself has no tensor math; the Pallas kernel
        # lives in the inner module's forward.
        return self.module(*args, **kwargs)

    def __call__(self, *args, **kwargs):
        return self.forward(*args, **kwargs)


# ----------------------------------------------------------------------------
# Main
# ----------------------------------------------------------------------------
if __name__ == "__main__":
    key = jax.random.PRNGKey(0)
    k_param, k_x = jax.random.split(key)

    batch, seq, hidden = 2, 8, 32
    inner = InnerLinearModule(hidden, hidden, k_param)
    wrapped = ModuleProxyWrapper(FakeDDP(inner))

    # proxy semantics checks (mirrors the docstring usage)
    assert wrapped.xyz == "hello world"
    assert wrapped.state_dict().keys() == inner.state_dict().keys()
    # load_state_dict round-trip forwards to the twice-wrapped module
    wrapped.load_state_dict(inner.state_dict())

    x = jax.random.normal(k_x, (batch * seq, hidden), jnp.float32)  # [N, D]
    y = wrapped(x)  # forward delegates down to the Pallas linear kernel
    y = jax.block_until_ready(y)

    # correctness check against plain JAX reference (bf16 inputs -> loose tol)
    y_ref = x @ inner.weight.T + inner.bias
    assert y.shape == (batch * seq, hidden)
    assert jnp.allclose(y, y_ref, atol=1e-2, rtol=1e-2)

    print("KERNEL_OK")
</pallas_src>

<mosaic_0001>
module attributes {stable_mosaic.version = 11 : i64} {
  func.func @_linear_kernel(%arg0: i32, %arg1: i32, %arg2: i32, %arg3: memref<16x128xbf16, #tpu.memory_space<vmem>>, %arg4: memref<128x128xbf16, #tpu.memory_space<vmem>>, %arg5: memref<1x128xf32, #tpu.memory_space<vmem>>, %arg6: memref<16x128xf32, #tpu.memory_space<vmem>>, %arg7: memref<16x128xf32, #tpu.memory_space<vmem>>) attributes {dimension_semantics = [#tpu.dimension_semantics<parallel>, #tpu.dimension_semantics<parallel>, #tpu.dimension_semantics<arbitrary>], iteration_bounds = array<i64: 1, 1, 1>, scalar_prefetch = 0 : i64, scratch_operands = 1 : i64, tpu.core_type = #tpu.core_type<tc>, window_params = [{transform_indices = @transform_0, window_bounds = array<i64: 16, 128>}, {transform_indices = @transform_1, window_bounds = array<i64: 128, 128>}, {transform_indices = @transform_2, window_bounds = array<i64: 1, 128>}, {transform_indices = @transform_3, window_bounds = array<i64: 16, 128>}]} {
    %c0_i32 = arith.constant 0 : i32
    %0 = arith.cmpi eq, %arg2, %c0_i32 : i32
    %1 = arith.extui %0 : i1 to i32
    %c0_i32_0 = arith.constant 0 : i32
    %2 = arith.cmpi ne, %1, %c0_i32_0 : i32
    scf.if %2 {
      %cst_10 = arith.constant 0.000000e+00 : f32
      %12 = vector.broadcast %cst_10 : f32 to vector<16x128xf32>
      %c0_11 = arith.constant 0 : index
      %c0_12 = arith.constant 0 : index
      %13 = vector.load %arg7[%c0_11, %c0_12] : memref<16x128xf32, #tpu.memory_space<vmem>>, vector<16x128xf32>
      tpu.vector_store %arg7[%c0_11, %c0_12], %12 {strides = array<i32>} : memref<16x128xf32, #tpu.memory_space<vmem>>, vector<16x128xf32>,
    } else {
    }
    %c0 = arith.constant 0 : index
    %c0_1 = arith.constant 0 : index
    %3 = vector.load %arg7[%c0, %c0_1] : memref<16x128xf32, #tpu.memory_space<vmem>>, vector<16x128xf32>
    %c0_2 = arith.constant 0 : index
    %c0_3 = arith.constant 0 : index
    %4 = vector.load %arg3[%c0_2, %c0_3] : memref<16x128xbf16, #tpu.memory_space<vmem>>, vector<16x128xbf16>
    %c0_4 = arith.constant 0 : index
    %c0_5 = arith.constant 0 : index
    %5 = vector.load %arg4[%c0_4, %c0_5] : memref<128x128xbf16, #tpu.memory_space<vmem>>, vector<128x128xbf16>
    %cst = arith.constant dense<0.000000e+00> : vector<16x128xf32>
    %6 = tpu.matmul %4, %5, %cst {dimension_numbers = #tpu.dot_dimension_numbers<[1], [0], [0], [1], [0, 0, 1, 1], [], []>} : vector<16x128xbf16>, vector<128x128xbf16>, vector<16x128xf32> -> vector<16x128xf32>
    %7 = arith.addf %3, %6 : vector<16x128xf32>
    %c0_6 = arith.constant 0 : index
    %c0_7 = arith.constant 0 : index
    %8 = vector.load %arg7[%c0_6, %c0_7] : memref<16x128xf32, #tpu.memory_space<vmem>>, vector<16x128xf32>
    tpu.vector_store %arg7[%c0_6, %c0_7], %7 {strides = array<i32>} : memref<16x128xf32, #tpu.memory_space<vmem>>, vector<16x128xf32>,
    %c0_i32_8 = arith.constant 0 : i32
    %9 = arith.cmpi eq, %arg2, %c0_i32_8 : i32
    %10 = arith.extui %9 : i1 to i32
    %c0_i32_9 = arith.constant 0 : i32
    %11 = arith.cmpi ne, %10, %c0_i32_9 : i32
    scf.if %11 {
      %c0_10 = arith.constant 0 : index
      %c0_11 = arith.constant 0 : index
      %12 = vector.load %arg7[%c0_10, %c0_11] : memref<16x128xf32, #tpu.memory_space<vmem>>, vector<16x128xf32>
      %c0_12 = arith.constant 0 : index
      %c0_13 = arith.constant 0 : index
      %13 = vector.load %arg5[%c0_12, %c0_13] : memref<1x128xf32, #tpu.memory_space<vmem>>, vector<1x128xf32>
      %14 = vector.broadcast %13 : vector<1x128xf32> to vector<16x128xf32>
      %15 = arith.addf %12, %14 : vector<16x128xf32>
      %c0_14 = arith.constant 0 : index
      %c0_15 = arith.constant 0 : index
      %16 = vector.load %arg6[%c0_14, %c0_15] : memref<16x128xf32, #tpu.memory_space<vmem>>, vector<16x128xf32>
      tpu.vector_store %arg6[%c0_14, %c0_15], %15 {strides = array<i32>} : memref<16x128xf32, #tpu.memory_space<vmem>>, vector<16x128xf32>,
    } else {
    }
    return
  }
  func.func @transform_0(%arg0: i32, %arg1: i32, %arg2: i32) -> (i32, i32) {
    %c0_i32 = arith.constant 0 : i32
    return %arg0, %arg2 : i32, i32
  }
  func.func @transform_1(%arg0: i32, %arg1: i32, %arg2: i32) -> (i32, i32) {
    %c0_i32 = arith.constant 0 : i32
    return %arg2, %arg1 : i32, i32
  }
  func.func @transform_2(%arg0: i32, %arg1: i32, %arg2: i32) -> (i32, i32) {
    %c0_i32 = arith.constant 0 : i32
    %c0_i32_0 = arith.constant 0 : i32
    return %c0_i32, %arg1 : i32, i32
  }
  func.func @transform_3(%arg0: i32, %arg1: i32, %arg2: i32) -> (i32, i32) {
    %c0_i32 = arith.constant 0 : i32
    return %arg0, %arg1 : i32, i32
  }
}

</mosaic_0001>

<bundles_post_ra>
// kernel: linear_pallas_forward.1
= control target key start
LH: loop header
LB: loop body
LE: loop exit
PB: predicated region body
PF: predicated region fallthrough
CT: control target
= control target key end

     0   :  { %8 = vsyncpa [#allocation4], 0  ;;  %s350_s0 = inlined_call_operand.vmem [shape: bf16[16,128], index: 0, kind: input, shape index: {}]   ;;  %s351_s1 = inlined_call_operand.hbm [shape: bf16[128,128], index: 1, kind: input, shape index: {}]   ;;  %s352_s2 = inlined_call_operand.vmem [shape: f32[1,128], index: 2, kind: input, shape index: {}]   ;;  %s353_s3 = inlined_call_operand.hbm [shape: f32[16,128], index: 3, kind: output, shape index: {}]  }
   0x1   :  { %9 = vsyncpa [#allocation5], 0  ;;  %s292_s12 = smov [#allocation3]   ;;  %s244_s16 = scalar_lea.hbm %s351_s1, 1024 }
   0x2   :  { %s17_s13 = sshll.u32 %s292_s12, 4  ;;  %p245_p0 = scmp.ne.s32.totalorder %s351_s1, %s244_s16  ;;  %s18_s13 = int_to_ptr.vmem [resolvable:$true] %s17_s13 }
   0x3   :  { %p248_p1 = scmp.lt.u32.totalorder %s244_s16, %s351_s1 }
   0x5   :  { %p250_p2 = pnand %p248_p1, %p245_p0 }
   0x7   :  { %253 = shalt.err (!%p250_p2)
}
   0x8   :  { %s254_s21 = scalar_lea.vmem %s18_s13, 1024  ;;  %p259_p4 = scmp.lt.s32.totalorder %s18_s13, %s18_s13 }
   0x9   :  { %p255_p3 = scmp.ne.s32.totalorder %s18_s13, %s254_s21  ;;  %p260_p5 = scmp.lt.s32.totalorder %s254_s21, %s254_s21 }
   0xb   :  { %p261_p6 = por %p260_p5, %p259_p4 }
   0xd   :  { %p262_p7 = pnand %p261_p6, %p255_p3 }
   0xf   :  { %265 = shalt.err (!%p262_p7)
}
  0x10   :  { %s293_s22 = smov 64   ;;  %s294_s23 = smov 4  }
  0x11   :  { %23 = dma.hbm_to_vmem [thread:$0]  %s351_s1, 1024, %s18_s13, [#allocation4], %s293_s22, %s293_s22, %s294_s23  }
  0x12   :  { %288 = dma.done.wait [#allocation4], 1024  }
  0x13   :  { %289 = vsyncadd [#allocation4], 4294966272  ;;  %v295_v0 = vmov 0.0   ;;  %vm296_vm0 = vmmov 0   ;;  %v235_v1 = vld [vmem:[#allocation3] sm:$0xff]   ;;  %v236_v2 = vld [vmem:[#allocation3 + $0x8] sm:$0xff]  }
  0x14   :  { %207 = vmatprep.subr.bf16.mxu0 %v295_v0  ;;  %223 = vmatprep.mubr.msk.bf16.mxu0 %vm296_vm0, %v295_v0  ;;  %v237_v3 = vld [vmem:[#allocation3 + $0x10] sm:$0xff]   ;;  %v238_v4 = vld [vmem:[#allocation3 + $0x18] sm:$0xff]   ;;  %v239_v5 = vld [vmem:[#allocation3 + $0x20] sm:$0xff]   ;;  %s297_s29 = smov [#allocation6]  }
  0x15   :  { %208 = vmatpush3.bf16.msra.mxu0 %v235_v1  ;;  %v240_v6 = vld [vmem:[#allocation3 + $0x28] sm:$0xff]   ;;  %v241_v7 = vld [vmem:[#allocation3 + $0x30] sm:$0xff]   ;;  %v242_v8 = vld [vmem:[#allocation3 + $0x38] sm:$0xff]   ;;  %s176_s30 = sshll.u32 %s297_s29, 4  ;;  %s177_s30 = int_to_ptr.vmem [resolvable:$true] %s176_s30 }
  0x16   :  { %209 = vmatprep.subr.bf16.mxu0 %v295_v0  ;;  %v243_v9 = vld [vmem:[%s350_s0] sm:$0xff]   ;;  %s266_s4 = scalar_lea.vmem %s177_s30, 256  ;;  %p271_p9 = scmp.lt.s32.totalorder %s177_s30, %s177_s30 }
  0x17   :  { %v197_v10 = vld [vmem:[%s352_s2] ss:$0 sm:$0xff]  ;;  %p267_p8 = scmp.ne.s32.totalorder %s177_s30, %s266_s4  ;;  %p272_p10 = scmp.lt.s32.totalorder %s266_s4, %s266_s4 }
  0x19   :  { %210 = vmatpush3.bf16.msra.mxu0 %v236_v2  ;;  %p273_p11 = por %p272_p10, %p271_p9 }
  0x1a   :  { %211 = vmatprep.subr.bf16.mxu0 %v295_v0 }
  0x1b   :  { %p274_p12 = pnand %p273_p11, %p267_p8 }
  0x1d   :  { %212 = vmatpush3.bf16.msra.mxu0 %v237_v3 }
  0x1e   :  { %213 = vmatprep.subr.bf16.mxu0 %v295_v0 }
  0x21   :  { %214 = vmatpush3.bf16.msra.mxu0 %v238_v4 }
  0x22   :  { %215 = vmatprep.subr.bf16.mxu0 %v295_v0 }
  0x25   :  { %216 = vmatpush3.bf16.msra.mxu0 %v239_v5 }
  0x26   :  { %217 = vmatprep.subr.bf16.mxu0 %v295_v0 }
  0x29   :  { %218 = vmatpush3.bf16.msra.mxu0 %v240_v6 }
  0x2a   :  { %219 = vmatprep.subr.bf16.mxu0 %v295_v0 }
  0x2d   :  { %220 = vmatpush3.bf16.msra.mxu0 %v241_v7 }
  0x2e   :  { %221 = vmatprep.subr.bf16.mxu0 %v295_v0 }
  0x31   :  { %222 = vmatpush3.bf16.msra.mxu0 %v242_v8 }
  0x34   :  { %224 = vmatmul.mubr.bf16.vlgmr.msra.gmra.mrb[0].mxu0 %v243_v9 }
 0x107   :  { %v144_v11 = vpop.f32.mrb[0].mxu0 }
 0x108   :  { %v167_v12 = vadd.f32 %v197_v10, %v144_v11  ;;  %v225_v13 = vpop.f32.mrb[1].mxu0 }
 0x109   :  { %v147_v14 = vpop.f32.mrb[2].mxu0 }
 0x10a   :  { %169 = vst [vmem:[#allocation6] sm:$0xff] %v167_v12  ;;  %v168_v15 = vadd.f32 %v197_v10, %v147_v14  ;;  %v226_v16 = vpop.f32.mrb[3].mxu0 }
 0x10c   :  { %170 = vst [vmem:[#allocation6 + $0x8] sm:$0xff] %v168_v15 }
 0x10d   :  { %277 = shalt.err (!%p274_p12)
}
 0x10e   :  { %s278_s5 = scalar_lea.hbm %s353_s3, 256 }
 0x10f   :  { %p279_p13 = scmp.ne.s32.totalorder %s353_s3, %s278_s5  ;;  %p282_p0 = scmp.lt.u32.totalorder %s278_s5, %s353_s3 }
 0x111   :  { %p284_p1 = pnand %p282_p0, %p279_p13 }
 0x113   :  { %287 = shalt.err (!%p284_p1)
}
 0x114   :  { %s298_s10 = smov 128   ;;  %s299_s11 = smov 8  }
 0x115   :  { %182 = dma.vmem_to_hbm [thread:$0]  %s177_s30, 256, %s353_s3, [#allocation5], %s298_s10, %s298_s10, %s299_s11  }
 0x116   :  { %290 = dma.done.wait [#allocation5], 256  }
 0x117   :  { %291 = vsyncadd [#allocation5], 4294967040 }
 0x118   :  { %186 = vsyncpa [#allocation4], 1 }
 0x119   :  { %187 = vsyncpa [#allocation5], 1 }

</bundles_post_ra>
